<compile_context>
chip_gen: v7x
topology: tpu7x:2x2x1
jax: 0.10.0
libtpu: 0.0.40
codegen_flags: <defaults>
</compile_context>

<pallas_src>
import functools

import jax
import jax.numpy as jnp
from jax.experimental import pallas as pl
from jax.experimental.pallas import tpu as pltpu

SPLIT = 96                  # every split_with_sizes chunk is 96 channels
X1_CHANNELS = 21 * SPLIT    # 2016 (fixed by the split sizes in the module)
X2_CHANNELS = 4 * SPLIT     # 384


def _segment_plan(cy: int, cz: int):
    """Coalesced static plan of (source, src_start_col, width) segments along
    dim 1, reproducing the aten.cat order of the PyTorch module exactly."""
    return [
        ("z",  0,          cz),          # z
        ("x1", 0 * SPLIT,  6 * SPLIT),   # getitem_71..76 -> x1 splits 0..5
        ("x1", 15 * SPLIT, 3 * SPLIT),   # getitem_82..84 -> x1 splits 15..17
        ("y",  0,          cy),          # y
        ("x1", 10 * SPLIT, 5 * SPLIT),   # getitem_77..81 -> x1 splits 10..14
        ("y",  0,          cy),          # y
        ("x2", 0,          4 * SPLIT),   # getitem_85..88 -> x2 splits 0..3
        ("z",  0,          cz),          # z
    ]


def _cat_kernel(x1_ref, x2_ref, y_ref, z_ref, out_ref, *, plan):
    refs = {"x1": x1_ref, "x2": x2_ref, "y": y_ref, "z": z_ref}
    # All slice starts/widths are static Python ints -> zero-cost ref views.
    # Independent wide window stores (no intermediate concatenated slab) let
    # Mosaic schedule the copies against the pipeline DMAs.
    dst = 0
    for name, src, w in plan:
        out_ref[:, dst:dst + w] = refs[name][:, src:src + w]
        dst += w


def _pick_batch_tile(b: int, bytes_per_row_double_buffered: int) -> int:
    """Batch tile: full batch when tiny, otherwise a multiple of 8 rows sized
    so the double-buffered in+out footprint stays ~8 MiB (fits the default
    scoped VMEM limit on v5e/v6e/v7x with headroom)."""
    if b <= 8:
        return b
    budget = 8 << 20
    tb = budget // max(bytes_per_row_double_buffered, 1)
    tb = (min(tb, b) // 8) * 8
    return max(tb, 8)


def split_cat_partial(x1, x2, y, z):
    assert x1.ndim == 2 and x2.ndim == 2 and y.ndim == 2 and z.ndim == 2
    assert x1.shape[1] == X1_CHANNELS and x2.shape[1] == X2_CHANNELS
    assert x1.shape[0] == x2.shape[0] == y.shape[0] == z.shape[0]
    b = x1.shape[0]
    cy, cz = y.shape[1], z.shape[1]
    plan = _segment_plan(cy, cz)
    out_cols = sum(w for _, _, w in plan)

    itemsize = jnp.dtype(x1.dtype).itemsize
    in_cols = X1_CHANNELS + X2_CHANNELS + cy + cz
    tb = _pick_batch_tile(b, (in_cols + out_cols) * itemsize * 2)

    kernel = functools.partial(_cat_kernel, plan=plan)
    spec = lambda cols: pl.BlockSpec((tb, cols), lambda i: (i, 0))

    return pl.pallas_call(
        kernel,
        out_shape=jax.ShapeDtypeStruct((b, out_cols), x1.dtype),
        grid_spec=pltpu.PrefetchScalarGridSpec(
            num_scalar_prefetch=0,
            grid=(pl.cdiv(b, tb),),
            in_specs=[spec(X1_CHANNELS), spec(X2_CHANNELS), spec(cy), spec(cz)],
            out_specs=spec(out_cols),
        ),
        compiler_params=pltpu.CompilerParams(
            dimension_semantics=("parallel",)),
    )(x1, x2, y, z)


def _reference(x1, x2, y, z):
    """Independent reference built directly from the torch graph's split/cat
    order (does NOT share the coalesced plan with the kernel)."""
    s1 = [x1[:, i * SPLIT:(i + 1) * SPLIT] for i in range(21)]
    s2 = [x2[:, i * SPLIT:(i + 1) * SPLIT] for i in range(4)]
    return jnp.concatenate(
        [z,
         s1[0], s1[1], s1[2], s1[3], s1[4], s1[5],
         s1[15], s1[16], s1[17],
         y,
         s1[10], s1[11], s1[12], s1[13], s1[14],
         y,
         s2[0], s2[1], s2[2], s2[3],
         z],
        axis=1)


def _run_case(key, b, cy, cz):
    k1, k2, k3, k4 = jax.random.split(key, 4)
    x1 = jax.random.normal(k1, (b, X1_CHANNELS), dtype=jnp.float32)
    x2 = jax.random.normal(k2, (b, X2_CHANNELS), dtype=jnp.float32)
    y = jax.random.normal(k3, (b, cy), dtype=jnp.float32)
    z = jax.random.normal(k4, (b, cz), dtype=jnp.float32)

    out = split_cat_partial(x1, x2, y, z)
    jax.block_until_ready(out)

    ref = _reference(x1, x2, y, z)
    assert out.shape == ref.shape, (out.shape, ref.shape)
    assert jnp.array_equal(out, ref), f"mismatch vs reference (b={b})"


if __name__ == "__main__":
    key = jax.random.PRNGKey(0)
    k_a, k_b = jax.random.split(key, 2)
    # Small test shape (full-batch block path).
    _run_case(k_a, b=2, cy=64, cz=32)
    # Slightly larger batch to exercise the multiple-of-8 batch-tiled path.
    _run_case(k_b, b=40, cy=64, cz=32)
    print("KERNEL_OK")
</pallas_src>

<mosaic_0001>
module attributes {stable_mosaic.version = 11 : i64} {
  func.func @_cat_kernel(%arg0: i32, %arg1: memref<2x2016xf32, #tpu.memory_space<vmem>>, %arg2: memref<2x384xf32, #tpu.memory_space<vmem>>, %arg3: memref<2x64xf32, #tpu.memory_space<vmem>>, %arg4: memref<2x32xf32, #tpu.memory_space<vmem>>, %arg5: memref<2x1920xf32, #tpu.memory_space<vmem>>) attributes {dimension_semantics = [#tpu.dimension_semantics<parallel>], iteration_bounds = array<i64: 1>, scalar_prefetch = 0 : i64, scratch_operands = 0 : i64, tpu.core_type = #tpu.core_type<tc>, window_params = [{transform_indices = @transform_0, window_bounds = array<i64: 2, 2016>}, {transform_indices = @transform_1, window_bounds = array<i64: 2, 384>}, {transform_indices = @transform_2, window_bounds = array<i64: 2, 64>}, {transform_indices = @transform_3, window_bounds = array<i64: 2, 32>}, {transform_indices = @transform_4, window_bounds = array<i64: 2, 1920>}]} {
    %c0 = arith.constant 0 : index
    %c0_0 = arith.constant 0 : index
    %0 = vector.load %arg4[%c0, %c0_0] : memref<2x32xf32, #tpu.memory_space<vmem>>, vector<2x32xf32>
    %c0_1 = arith.constant 0 : index
    %c0_2 = arith.constant 0 : index
    %1 = vector.load %arg5[%c0_1, %c0_2] : memref<2x1920xf32, #tpu.memory_space<vmem>>, vector<2x32xf32>
    tpu.vector_store %arg5[%c0_1, %c0_2], %0 {strides = array<i32>} : memref<2x1920xf32, #tpu.memory_space<vmem>>, vector<2x32xf32>,
    %c0_3 = arith.constant 0 : index
    %c0_4 = arith.constant 0 : index
    %2 = vector.load %arg1[%c0_3, %c0_4] : memref<2x2016xf32, #tpu.memory_space<vmem>>, vector<2x576xf32>
    %c0_5 = arith.constant 0 : index
    %c32 = arith.constant 32 : index
    %3 = vector.load %arg5[%c0_5, %c32] : memref<2x1920xf32, #tpu.memory_space<vmem>>, vector<2x576xf32>
    tpu.vector_store %arg5[%c0_5, %c32], %2 {strides = array<i32>} : memref<2x1920xf32, #tpu.memory_space<vmem>>, vector<2x576xf32>,
    %c0_6 = arith.constant 0 : index
    %c1440 = arith.constant 1440 : index
    %4 = vector.load %arg1[%c0_6, %c1440] : memref<2x2016xf32, #tpu.memory_space<vmem>>, vector<2x288xf32>
    %c0_7 = arith.constant 0 : index
    %c608 = arith.constant 608 : index
    %5 = vector.load %arg5[%c0_7, %c608] : memref<2x1920xf32, #tpu.memory_space<vmem>>, vector<2x288xf32>
    tpu.vector_store %arg5[%c0_7, %c608], %4 {strides = array<i32>} : memref<2x1920xf32, #tpu.memory_space<vmem>>, vector<2x288xf32>,
    %c0_8 = arith.constant 0 : index
    %c0_9 = arith.constant 0 : index
    %6 = vector.load %arg3[%c0_8, %c0_9] : memref<2x64xf32, #tpu.memory_space<vmem>>, vector<2x64xf32>
    %c0_10 = arith.constant 0 : index
    %c896 = arith.constant 896 : index
    %7 = vector.load %arg5[%c0_10, %c896] : memref<2x1920xf32, #tpu.memory_space<vmem>>, vector<2x64xf32>
    tpu.vector_store %arg5[%c0_10, %c896], %6 {strides = array<i32>} : memref<2x1920xf32, #tpu.memory_space<vmem>>, vector<2x64xf32>,
    %c0_11 = arith.constant 0 : index
    %c960 = arith.constant 960 : index
    %8 = vector.load %arg1[%c0_11, %c960] : memref<2x2016xf32, #tpu.memory_space<vmem>>, vector<2x480xf32>
    %c0_12 = arith.constant 0 : index
    %c960_13 = arith.constant 960 : index
    %9 = vector.load %arg5[%c0_12, %c960_13] : memref<2x1920xf32, #tpu.memory_space<vmem>>, vector<2x480xf32>
    tpu.vector_store %arg5[%c0_12, %c960_13], %8 {strides = array<i32>} : memref<2x1920xf32, #tpu.memory_space<vmem>>, vector<2x480xf32>,
    %c0_14 = arith.constant 0 : index
    %c0_15 = arith.constant 0 : index
    %10 = vector.load %arg3[%c0_14, %c0_15] : memref<2x64xf32, #tpu.memory_space<vmem>>, vector<2x64xf32>
    %c0_16 = arith.constant 0 : index
    %c1440_17 = arith.constant 1440 : index
    %11 = vector.load %arg5[%c0_16, %c1440_17] : memref<2x1920xf32, #tpu.memory_space<vmem>>, vector<2x64xf32>
    tpu.vector_store %arg5[%c0_16, %c1440_17], %10 {strides = array<i32>} : memref<2x1920xf32, #tpu.memory_space<vmem>>, vector<2x64xf32>,
    %c0_18 = arith.constant 0 : index
    %c0_19 = arith.constant 0 : index
    %12 = vector.load %arg2[%c0_18, %c0_19] : memref<2x384xf32, #tpu.memory_space<vmem>>, vector<2x384xf32>
    %c0_20 = arith.constant 0 : index
    %c1504 = arith.constant 1504 : index
    %13 = vector.load %arg5[%c0_20, %c1504] : memref<2x1920xf32, #tpu.memory_space<vmem>>, vector<2x384xf32>
    tpu.vector_store %arg5[%c0_20, %c1504], %12 {strides = array<i32>} : memref<2x1920xf32, #tpu.memory_space<vmem>>, vector<2x384xf32>,
    %c0_21 = arith.constant 0 : index
    %c0_22 = arith.constant 0 : index
    %14 = vector.load %arg4[%c0_21, %c0_22] : memref<2x32xf32, #tpu.memory_space<vmem>>, vector<2x32xf32>
    %c0_23 = arith.constant 0 : index
    %c1888 = arith.constant 1888 : index
    %15 = vector.load %arg5[%c0_23, %c1888] : memref<2x1920xf32, #tpu.memory_space<vmem>>, vector<2x32xf32>
    tpu.vector_store %arg5[%c0_23, %c1888], %14 {strides = array<i32>} : memref<2x1920xf32, #tpu.memory_space<vmem>>, vector<2x32xf32>,
    return
  }
  func.func @transform_0(%arg0: i32) -> (i32, i32) {
    %c0_i32 = arith.constant 0 : i32
    %c0_i32_0 = arith.constant 0 : i32
    return %arg0, %c0_i32 : i32, i32
  }
  func.func @transform_1(%arg0: i32) -> (i32, i32) {
    %c0_i32 = arith.constant 0 : i32
    %c0_i32_0 = arith.constant 0 : i32
    return %arg0, %c0_i32 : i32, i32
  }
  func.func @transform_2(%arg0: i32) -> (i32, i32) {
    %c0_i32 = arith.constant 0 : i32
    %c0_i32_0 = arith.constant 0 : i32
    return %arg0, %c0_i32 : i32, i32
  }
  func.func @transform_3(%arg0: i32) -> (i32, i32) {
    %c0_i32 = arith.constant 0 : i32
    %c0_i32_0 = arith.constant 0 : i32
    return %arg0, %c0_i32 : i32, i32
  }
  func.func @transform_4(%arg0: i32) -> (i32, i32) {
    %c0_i32 = arith.constant 0 : i32
    %c0_i32_0 = arith.constant 0 : i32
    return %arg0, %c0_i32 : i32, i32
  }
}

</mosaic_0001>

<bundles_post_ra>
// kernel: tpu_custom_call.1
= control target key start
LH: loop header
LB: loop body
LE: loop exit
PB: predicated region body
PF: predicated region fallthrough
CT: control target
= control target key end

     0   :  { %9 = vsyncpa [#allocation3], 0  ;;  %s335_s0 = inlined_call_operand.hbm [shape: f32[2,2016], index: 0, kind: input, shape index: {}]   ;;  %s336_s1 = inlined_call_operand.hbm [shape: f32[2,384], index: 1, kind: input, shape index: {}]   ;;  %s337_s2 = inlined_call_operand.vmem [shape: f32[2,64], index: 2, kind: input, shape index: {}]   ;;  %s338_s3 = inlined_call_operand.vmem [shape: f32[2,32], index: 3, kind: input, shape index: {}]   ;;  %s339_s4 = inlined_call_operand.hbm [shape: f32[2,1920], index: 4, kind: output, shape index: {}]  }
   0x1   :  { %10 = vsyncpa [#allocation6], 0 }
   0x2   :  { %11 = vsyncpa [#allocation4], 0  ;;  %s226_s15 = smov [#allocation2]   ;;  %s227_s17 = smov [#allocation5]  }
   0x3   :  { %s18_s16 = sshll.u32 %s226_s15, 4  ;;  %s28_s18 = sshll.u32 %s227_s17, 4  ;;  %s19_s16 = int_to_ptr.vmem [resolvable:$true] %s18_s16  ;;  %s29_s18 = int_to_ptr.vmem [resolvable:$true] %s28_s18 }
   0x4   :  { %s154_s21 = scalar_lea.hbm %s335_s0, 512 }
   0x5   :  { %p155_p0 = scmp.ne.s32.totalorder %s335_s0, %s154_s21  ;;  %p158_p1 = scmp.lt.u32.totalorder %s154_s21, %s335_s0 }
   0x7   :  { %p160_p2 = pnand %p158_p1, %p155_p0 }
   0x9   :  { %163 = shalt.err (!%p160_p2)
}
   0xa   :  { %s164_s26 = scalar_lea.vmem %s19_s16, 512  ;;  %p169_p4 = scmp.lt.s32.totalorder %s19_s16, %s19_s16 }
   0xb   :  { %p165_p3 = scmp.ne.s32.totalorder %s19_s16, %s164_s26  ;;  %p170_p5 = scmp.lt.s32.totalorder %s164_s26, %s164_s26 }
   0xd   :  { %p171_p6 = por %p170_p5, %p169_p4 }
   0xf   :  { %p172_p7 = pnand %p171_p6, %p165_p3 }
  0x11   :  { %175 = shalt.err (!%p172_p7)
}
  0x12   :  { %21 = dma.hbm_to_vmem [thread:$0]  %s335_s0, 512, %s19_s16, [#allocation3]  }
  0x13   :  { %s176_s5 = scalar_lea.hbm %s336_s1, 96 }
  0x14   :  { %p177_p8 = scmp.ne.s32.totalorder %s336_s1, %s176_s5  ;;  %p180_p9 = scmp.lt.u32.totalorder %s176_s5, %s336_s1 }
  0x16   :  { %p182_p10 = pnand %p180_p9, %p177_p8 }
  0x18   :  { %185 = shalt.err (!%p182_p10)
}
  0x19   :  { %s186_s10 = scalar_lea.vmem %s29_s18, 96  ;;  %p191_p12 = scmp.lt.s32.totalorder %s29_s18, %s29_s18 }
  0x1a   :  { %p187_p11 = scmp.ne.s32.totalorder %s29_s18, %s186_s10  ;;  %p192_p13 = scmp.lt.s32.totalorder %s186_s10, %s186_s10 }
  0x1c   :  { %p193_p0 = por %p192_p13, %p191_p12 }
  0x1e   :  { %p194_p1 = pnand %p193_p0, %p187_p11 }
  0x20   :  { %197 = shalt.err (!%p194_p1)
}
  0x21   :  { %31 = dma.hbm_to_vmem [thread:$0]  %s336_s1, 96, %s29_s18, [#allocation6]  }
  0x22   :  { %220 = dma.done.wait [#allocation3], 512  }
  0x23   :  { %221 = vsyncadd [#allocation3], 4294966784 }
  0x24   :  { %222 = dma.done.wait [#allocation6], 96  }
  0x25   :  { %223 = vsyncadd [#allocation6], 4294967200  ;;  %vm59_vm0 = vcmask 1041664   ;;  %vm60_vm1 = vcmask 1043458   ;;  %vm62_vm2 = vcmask 1045508   ;;  %vm64_vm4 = vcmask 1047558  }
  0x26   :  { %vm61_vm3 = vmor %vm60_vm1, %vm59_vm0  ;;  %vm86_vm5 = vcmask 1041920   ;;  %vm77_vm10 = vcmask 1042176   ;;  %v69_v1 = vld [vmem:[#allocation2 + $0x16] sm:$0x3f]  ;;  %v45_v2 = vld [vmem:[#allocation2] sm:$0xff]  ;;  %vm43_vm11 = vcmask 254976  }
  0x27   :  { %vm63_vm6 = vmor %vm62_vm2, %vm61_vm3  ;;  %s228_s1 = smov 64   ;;  %s229_s12 = smov 32   ;;  %v46_v3 = vld [vmem:[#allocation2 + $0x8] sm:$0x3]  ;;  %vm82_vm13 = vcmask 517120   ;;  %v84_v10 = vld [vmem:[#allocation2 + $0xe] sm:$0xff] }
  0x28   :  { %vm284_vm7 = vmor %vm64_vm4, %vm63_vm6  ;;  %71 = vrot.lane.b32.xlu1 %v69_v1, %s228_s1  ;;  %49 = vrot.lane.b32.xlu0 %v45_v2, %s229_s12  ;;  %v106_v5 = vld [vmem:[#allocation5] sm:$0x3f]  ;;  %v85_v7 = vld [vmem:[#allocation2 + $0x16] sm:$0x3]  ;;  %s230_s17 = smov 96   ;;  %vm54_vm0 = vcmask 261120  }
  0x29   :  { %vm87_vm8 = vmor %vm60_vm1, %vm86_vm5  ;;  %v42_v6 = vld [vmem:[%s338_s3] sm:$0x3]  ;;  %91 = vst.msk [vmem:[#allocation7 + $0x16] sm:$0x3] %vm43_vm11, %v85_v7  ;;  %vm114_vm3 = vcmask 785414   ;;  %vm104_vm5 = vcmask 779520  }
  0x2a   :  { %vm88_vm9 = vmor %vm62_vm2, %vm87_vm8  ;;  %44 = vst.msk [vmem:[#allocation7] sm:$0x3] %vm43_vm11, %v42_v6  ;;  %v81_v9 = vld [vmem:[%s337_s2] sm:$0x3] }
  0x2b   :  { %vm291_vm12 = vmor %vm64_vm4, %vm88_vm9  ;;  %83 = vst.msk [vmem:[#allocation7 + $0xe] sm:$0x3] %vm82_vm13, %v81_v9  ;;  %v146_v11 = vld.sshfl [vmem:[%s337_s2] sm:$0x3 pattern:$0x76325410] }
  0x2c   :  { %vm78_vm14 = vmor %vm60_vm1, %vm77_vm10  ;;  %51 = vrot.lane.b32.xlu1 %v46_v3, %s229_s12  ;;  %108 = vrot.lane.b32.xlu0 %v106_v5, %s230_s17  ;;  %90 = vst.msk [vmem:[#allocation7 + $0xe] sm:$0xff] %vm291_vm12, %v84_v10  ;;  %v147_v12 = vld.sshfl [vmem:[%s338_s3] sm:$0x3 pattern:$0x76325410]  ;;  %vm74_vm1 = vcmask 523264  }
  0x2d   :  { %vm301_vm15 = vmor %vm62_vm2, %vm78_vm14  ;;  %vm67_vm2 = vcmask 779264   ;;  %vm111_vm4 = vcmask 785408   ;;  %s231_s2 = smov [#allocation7]  }
  0x2e   :  { %s136_s3 = sshll.u32 %s231_s2, 4  ;;  %vm115_vm6 = vmor %vm114_vm3, %vm301_vm15  ;;  %s137_s3 = int_to_ptr.vmem [resolvable:$true] %s136_s3 }
  0x2f   :  { %s198_s22 = scalar_lea.vmem %s137_s3, 480  ;;  %p203_p3 = scmp.lt.s32.totalorder %s137_s3, %s137_s3 }
  0x30   :  { %101 = vrot.lane.b32.xlu0 %v146_v11, %s229_s12  ;;  %126 = vrot.lane.b32.xlu1 %v147_v12, %s230_s17  ;;  %p199_p2 = scmp.ne.s32.totalorder %s137_s3, %s198_s22  ;;  %p204_p4 = scmp.lt.s32.totalorder %s198_s22, %s198_s22 }
  0x32   :  { %p205_p5 = por %p204_p4, %p203_p3 }
  0x34   :  { %p206_p6 = pnand %p205_p5, %p199_p2 }
  0x9a   :  { %v72_v13 = vpop.permute.xlu1 %71  ;;  %v50_v14 = vpop.permute.xlu0 %49 }
  0x9b   :  { %v53_v15 = vrot.slane %v50_v14, 6  ;;  %v73_v16 = vrot.slane %v72_v13, 6 }
  0x9d   :  { %v55_v17 = vsel %vm54_vm0, %v53_v15, %v50_v14  ;;  %v75_v22 = vsel %vm74_vm1, %v73_v16, %v72_v13 }
  0x9e   :  { %66 = vst.msk [vmem:[#allocation7] sm:$0xff] %vm284_vm7, %v55_v17  ;;  %v52_v18 = vpop.permute.xlu1 %51  ;;  %v109_v19 = vpop.permute.xlu0 %108 }
  0x9f   :  { %v56_v20 = vsel %vm54_vm0, %v53_v15, %v52_v18  ;;  %v110_v21 = vrot.slane %v109_v19, 6 }
  0xa0   :  { %68 = vst.msk [vmem:[#allocation7 + $0x8] sm:$0x3] %vm67_vm2, %v56_v20 }
  0xa1   :  { %80 = vst.msk [vmem:[#allocation7 + $0x8] sm:$0x3f] %vm301_vm15, %v75_v22  ;;  %v112_v25 = vsel %vm111_vm4, %v110_v21, %v109_v19 }
  0xa2   :  { %v102_v23 = vpop.permute.xlu0 %101  ;;  %v127_v24 = vpop.permute.xlu1 %126 }
  0xa3   :  { %105 = vst.msk [vmem:[#allocation7 + $0x16] sm:$0x3] %vm104_vm5, %v102_v23 }
  0xa4   :  { %116 = vst.msk [vmem:[#allocation7 + $0x16] sm:$0xff] %vm115_vm6, %v112_v25 }
  0xa5   :  { %129 = vst.msk [vmem:[#allocation7 + $0x1c] sm:$0x3] %vm77_vm10, %v127_v24 }
  0xa6   :  { %209 = shalt.err (!%p206_p6)
}
  0xa7   :  { %s210_s25 = scalar_lea.hbm %s339_s4, 480 }
  0xa8   :  { %p211_p7 = scmp.ne.s32.totalorder %s339_s4, %s210_s25  ;;  %p214_p8 = scmp.lt.u32.totalorder %s210_s25, %s339_s4 }
  0xaa   :  { %p216_p9 = pnand %p214_p8, %p211_p7 }
  0xac   :  { %219 = shalt.err (!%p216_p9)
}
  0xad   :  { %139 = dma.vmem_to_hbm [thread:$0]  %s137_s3, 480, %s339_s4, [#allocation4]  }
  0xae   :  { %224 = dma.done.wait [#allocation4], 480  }
  0xaf   :  { %225 = vsyncadd [#allocation4], 4294966816 }
  0xb0   :  { %143 = vsyncpa [#allocation3], 1 }
  0xb1   :  { %144 = vsyncpa [#allocation6], 1 }
  0xb2   :  { %145 = vsyncpa [#allocation4], 1 }

</bundles_post_ra>
